<compile_context>
chip_gen: v5e
topology: v5e:2x2
jax: 0.10.0
libtpu: 0.0.40
codegen_flags: <defaults>
</compile_context>

<pallas_src>
import functools

import jax
import jax.numpy as jnp
from jax.experimental import pallas as pl
from jax.experimental.pallas import tpu as pltpu

HIDDEN = 100        # logical hidden size (matches nn.Linear(1, 100))
HIDDEN_PAD = 128    # sublane-exact padded hidden size
PARAM_COLS = 8      # columns in the packed parameter slab


def mlp_kernel(x_ref, p_ref, b2_ref, o_ref):
    # x_ref : (1, TB) f32   -- batch on lanes
    # p_ref : (HIDDEN_PAD, PARAM_COLS) f32 column slab for the current eval:
    #           col 0 = w1 (in->hidden, zero-padded rows 100..127)
    #           col 1 = b1
    #           col 2 = w2 (hidden->out, stored as a column)
    # b2_ref: (N_eval,) f32 in SMEM -- fc2 bias per eval
    # o_ref : (1, 1, TB) f32 -- lane-dense output row
    x = x_ref[...]                         # (1, TB)
    w1 = p_ref[:, 0:1]                     # (Hp, 1)
    b1 = p_ref[:, 1:2]                     # (Hp, 1)
    w2 = p_ref[:, 2:3]                     # (Hp, 1)
    b2 = b2_ref[pl.program_id(0)]          # scalar (SMEM read)

    # fc1 + ReLU: K=1 outer product on the VPU (broadcast FMA), batch on lanes.
    h = jnp.maximum(w1 * x + b1, 0.0)      # (Hp, TB)

    # fc2: N=1 reduction -> VPU multiply + XLU cross-sublane sum; result is
    # already a lane-dense (1, TB) row (no transpose, no masked narrow store).
    y = jnp.sum(h * w2, axis=0, keepdims=True) + b2   # (1, TB)

    o_ref[...] = y[None, :, :].astype(o_ref.dtype)


def pack_params(w1, b1, w2, b2, hidden_pad=HIDDEN_PAD):
    """Pack (1,H) w1, (1,H) b1, (H,1) w2 into one (hidden_pad, PARAM_COLS)
    column slab; return (slab, b2_scalar). Padded hidden rows are zero, so
    after ReLU they contribute exactly zero to fc2."""
    # This packing is specific to in_features == out_features == 1.
    assert w1.ndim == 2 and w1.shape[0] == 1, "pack_params assumes in_features == 1"
    assert w2.ndim == 2 and w2.shape[1] == 1, "pack_params assumes out_features == 1"
    h = w1.shape[-1]
    assert h <= hidden_pad
    slab = jnp.zeros((hidden_pad, PARAM_COLS), jnp.float32)
    slab = slab.at[:h, 0].set(w1.reshape(-1).astype(jnp.float32))
    slab = slab.at[:h, 1].set(b1.reshape(-1).astype(jnp.float32))
    slab = slab.at[:h, 2].set(w2.reshape(-1).astype(jnp.float32))
    b2s = jnp.asarray(b2, jnp.float32).reshape(())
    return slab, b2s


def _pick_tile(B, tile_b):
    if tile_b is None:
        tb = B
        if B > 2048:                       # amortize the ~0.35us per-step cost
            for cand in (2048, 1024, 512, 256, 128):
                if B % cand == 0:
                    tb = cand
                    break
        return tb
    tb = min(int(tile_b), B)
    assert B % tb == 0, f"tile_b={tb} must divide batch B={B}"
    assert tb % 128 == 0 or tb == B, (
        f"tile_b={tb} must be a multiple of 128 (lane tiling) or equal to B={B}")
    return tb


@functools.partial(jax.jit, static_argnames=("tile_b",))
def net_forward_multi(x, param_slabs, b2s, *, tile_b=None):
    """Evaluate N_eval parameter candidates on the same x in ONE pallas_call.

    x:           (B, 1) f32
    param_slabs: (N_eval, HIDDEN_PAD, PARAM_COLS) f32
    b2s:         (N_eval,) f32
    returns      (N_eval, B, 1) f32
    """
    assert x.ndim == 2 and x.shape[1] == 1, "Net.forward expects x of shape (B, 1)"
    B = x.shape[0]
    n_eval, hp, pc = param_slabs.shape
    assert hp == HIDDEN_PAD and pc == PARAM_COLS

    TB = _pick_tile(B, tile_b)
    num_tiles = B // TB

    # Lane-dense input: (B,1) -> (1,B) is a free contiguous reshape.
    x_row = jnp.reshape(x, (1, B)).astype(jnp.float32)
    b2s = jnp.reshape(b2s, (n_eval,)).astype(jnp.float32)
    param_slabs = param_slabs.astype(jnp.float32)

    # Megacore sharding only when each core gets meaningful work; otherwise
    # keep everything on one TC (splitting tiny work just duplicates overhead).
    work_per_core = (n_eval * B) // 2
    if (n_eval > 1 or num_tiles > 1) and work_per_core >= 512:
        semantics = ("parallel", "parallel")
    else:
        semantics = ("arbitrary", "arbitrary")

    cost = pl.CostEstimate(
        flops=5 * n_eval * B * HIDDEN_PAD,
        transcendentals=0,
        bytes_accessed=4 * (B + n_eval * B + n_eval * (HIDDEN_PAD * PARAM_COLS + 1)),
    )

    y = pl.pallas_call(
        mlp_kernel,
        out_shape=jax.ShapeDtypeStruct((n_eval, 1, B), jnp.float32),
        grid=(n_eval, num_tiles),
        in_specs=[
            # x row, lane-tiled over the batch axis.
            pl.BlockSpec((1, TB), lambda n, i: (0, i)),
            # One packed param slab per eval; constant over the tile axis so it
            # is DMA'd once per eval and stays resident in VMEM across tiles.
            pl.BlockSpec((None, HIDDEN_PAD, PARAM_COLS), lambda n, i: (n, 0, 0)),
            # fc2 biases live whole in SMEM (scalar read per eval).
            pl.BlockSpec(memory_space=pltpu.MemorySpace.SMEM),
        ],
        out_specs=pl.BlockSpec((1, 1, TB), lambda n, i: (n, 0, i)),
        compiler_params=pltpu.CompilerParams(dimension_semantics=semantics),
        cost_estimate=cost,
    )(x_row, param_slabs, b2s)

    return jnp.reshape(y, (n_eval, B, 1))


@functools.partial(jax.jit, static_argnames=("tile_b",))
def net_forward(x, param_slab, b2, *, tile_b=None):
    """Single forward pass: x (B,1), param_slab (HIDDEN_PAD, PARAM_COLS),
    b2 scalar -> (B, 1)."""
    y = net_forward_multi(x, param_slab[None], jnp.reshape(b2, (1,)), tile_b=tile_b)
    return y[0]


def init_params(key, in_features=1, hidden=HIDDEN, out_features=1):
    """Deterministic init mimicking PyTorch nn.Linear default
    (U[-1/sqrt(fan_in), 1/sqrt(fan_in)]). Stored pre-transposed (in x out)."""
    k1, k2, k3, k4 = jax.random.split(key, 4)
    bound1 = 1.0 / (in_features ** 0.5)
    bound2 = 1.0 / (hidden ** 0.5)
    w1 = jax.random.uniform(k1, (in_features, hidden), jnp.float32, -bound1, bound1)
    b1 = jax.random.uniform(k2, (1, hidden), jnp.float32, -bound1, bound1)
    w2 = jax.random.uniform(k3, (hidden, out_features), jnp.float32, -bound2, bound2)
    b2 = jax.random.uniform(k4, (1, out_features), jnp.float32, -bound2, bound2)
    return w1, b1, w2, b2


if __name__ == "__main__":
    key = jax.random.PRNGKey(0)
    kx, kp, kmulti = jax.random.split(key, 3)

    B, IN, H, OUT = 8, 1, HIDDEN, 1
    x = jax.random.normal(kx, (B, IN), jnp.float32)

    # --- single forward -----------------------------------------------------
    w1, b1, w2, b2 = init_params(kp, IN, H, OUT)
    slab, b2s = pack_params(w1, b1, w2, b2)

    y = net_forward(x, slab, b2s)
    jax.block_until_ready(y)

    ref = jnp.maximum(x @ w1 + b1, 0.0) @ w2 + b2
    assert y.shape == (B, OUT)
    assert jnp.allclose(y, ref, atol=1e-5, rtol=1e-5)

    # --- amortized multi-candidate forward (one pallas_call for N evals) ----
    N = 4
    keys = jax.random.split(kmulti, N)
    params_n = [init_params(k, IN, H, OUT) for k in keys]
    packed = [pack_params(*p) for p in params_n]
    slabs = jnp.stack([s for s, _ in packed])          # (N, 128, 8)
    b2s_n = jnp.stack([b for _, b in packed])          # (N,)

    ys = net_forward_multi(x, slabs, b2s_n)
    jax.block_until_ready(ys)
    assert ys.shape == (N, B, OUT)
    for j, (w1j, b1j, w2j, b2j) in enumerate(params_n):
        refj = jnp.maximum(x @ w1j + b1j, 0.0) @ w2j + b2j
        assert jnp.allclose(ys[j], refj, atol=1e-5, rtol=1e-5)

    print("KERNEL_OK")
</pallas_src>

<mosaic_0001>
module attributes {stable_mosaic.version = 11 : i64} {
  func.func @mlp_kernel(%arg0: i32, %arg1: i32, %arg2: memref<1x8xf32, #tpu.memory_space<vmem>>, %arg3: memref<1x128x8xf32, #tpu.memory_space<vmem>>, %arg4: memref<1xf32, #tpu.memory_space<smem>>, %arg5: memref<1x1x8xf32, #tpu.memory_space<vmem>>) attributes {dimension_semantics = [#tpu.dimension_semantics<arbitrary>, #tpu.dimension_semantics<arbitrary>], iteration_bounds = array<i64: 1, 1>, scalar_prefetch = 0 : i64, scratch_operands = 0 : i64, tpu.core_type = #tpu.core_type<tc>, window_params = [{transform_indices = @transform_0, window_bounds = array<i64: 1, 8>}, {transform_indices = @transform_1, window_bounds = array<i64: 1, 128, 8>}, {transform_indices = @transform_2, window_bounds = array<i64: 1>}, {transform_indices = @transform_3, window_bounds = array<i64: 1, 1, 8>}]} {
    %c0 = arith.constant 0 : index
    %c0_0 = arith.constant 0 : index
    %0 = vector.load %arg2[%c0, %c0_0] : memref<1x8xf32, #tpu.memory_space<vmem>>, vector<1x8xf32>
    %c0_1 = arith.constant 0 : index
    %c0_2 = arith.constant 0 : index
    %c0_3 = arith.constant 0 : index
    %1 = vector.load %arg3[%c0_1, %c0_2, %c0_3] : memref<1x128x8xf32, #tpu.memory_space<vmem>>, vector<1x128x1xf32>
    %2 = vector.shape_cast %1 : vector<1x128x1xf32> to vector<128x1xf32>
    %c0_4 = arith.constant 0 : index
    %c0_5 = arith.constant 0 : index
    %c1 = arith.constant 1 : index
    %3 = vector.load %arg3[%c0_4, %c0_5, %c1] : memref<1x128x8xf32, #tpu.memory_space<vmem>>, vector<1x128x1xf32>
    %4 = vector.shape_cast %3 : vector<1x128x1xf32> to vector<128x1xf32>
    %c0_6 = arith.constant 0 : index
    %c0_7 = arith.constant 0 : index
    %c2 = arith.constant 2 : index
    %5 = vector.load %arg3[%c0_6, %c0_7, %c2] : memref<1x128x8xf32, #tpu.memory_space<vmem>>, vector<1x128x1xf32>
    %6 = vector.shape_cast %5 : vector<1x128x1xf32> to vector<128x1xf32>
    %7 = arith.index_cast %arg0 : i32 to index
    %8 = memref.load %arg4[%7] : memref<1xf32, #tpu.memory_space<smem>>
    %9 = vector.broadcast %2 : vector<128x1xf32> to vector<128x8xf32>
    %10 = vector.broadcast %0 : vector<1x8xf32> to vector<128x8xf32>
    %11 = arith.mulf %9, %10 : vector<128x8xf32>
    %12 = vector.broadcast %4 : vector<128x1xf32> to vector<128x8xf32>
    %13 = arith.addf %11, %12 : vector<128x8xf32>
    %cst = arith.constant 0.000000e+00 : f32
    %14 = vector.broadcast %cst : f32 to vector<128x8xf32>
    %15 = arith.maximumf %13, %14 : vector<128x8xf32>
    %16 = vector.broadcast %6 : vector<128x1xf32> to vector<128x8xf32>
    %17 = arith.mulf %15, %16 : vector<128x8xf32>
    %cst_8 = arith.constant dense<0.000000e+00> : vector<8xf32>
    %18 = vector.multi_reduction <add>, %17, %cst_8 [0] : vector<128x8xf32> to vector<8xf32>
    %19 = vector.shape_cast %18 : vector<8xf32> to vector<1x8xf32>
    %20 = vector.broadcast %8 : f32 to vector<1x8xf32>
    %21 = arith.addf %19, %20 : vector<1x8xf32>
    %22 = vector.shape_cast %21 : vector<1x8xf32> to vector<1x1x8xf32>
    %c0_9 = arith.constant 0 : index
    %c0_10 = arith.constant 0 : index
    %c0_11 = arith.constant 0 : index
    %23 = vector.load %arg5[%c0_9, %c0_10, %c0_11] : memref<1x1x8xf32, #tpu.memory_space<vmem>>, vector<1x1x8xf32>
    tpu.vector_store %arg5[%c0_9, %c0_10, %c0_11], %22 {strides = array<i32>} : memref<1x1x8xf32, #tpu.memory_space<vmem>>, vector<1x1x8xf32>,
    return
  }
  func.func @transform_0(%arg0: i32, %arg1: i32) -> (i32, i32) {
    %c0_i32 = arith.constant 0 : i32
    %c0_i32_0 = arith.constant 0 : i32
    return %c0_i32, %arg1 : i32, i32
  }
  func.func @transform_1(%arg0: i32, %arg1: i32) -> (i32, i32, i32) {
    %c0_i32 = arith.constant 0 : i32
    %c0_i32_0 = arith.constant 0 : i32
    %c0_i32_1 = arith.constant 0 : i32
    return %arg0, %c0_i32, %c0_i32_0 : i32, i32, i32
  }
  func.func @transform_2(%arg0: i32, %arg1: i32) -> i32 {
    %c0_i32 = arith.constant 0 : i32
    %c0_i32_0 = arith.constant 0 : i32
    return %c0_i32 : i32
  }
  func.func @transform_3(%arg0: i32, %arg1: i32) -> (i32, i32, i32) {
    %c0_i32 = arith.constant 0 : i32
    %c0_i32_0 = arith.constant 0 : i32
    return %arg0, %c0_i32, %arg1 : i32, i32, i32
  }
}

</mosaic_0001>

<bundles_post_ra>
// kernel: net_forward_multi.1
= control target key start
LH: loop header
LB: loop body
LE: loop exit
PB: predicated region body
PF: predicated region fallthrough
CT: control target
= control target key end

     0   :  { %v407_v3 = vmov 0   ;;  %s572_s0 = inlined_call_operand.vmem [shape: f32[1,8], index: 0, kind: input, shape index: {}]   ;;  %s573_s1 = inlined_call_operand.vmem [shape: f32[1,128,8], index: 1, kind: input, shape index: {}]   ;;  %s574_s2 = inlined_call_operand.<no memory space> [shape: f32[1], index: 2, kind: input, shape index: {}]   ;;  %s575_s3 = inlined_call_operand.hbm [shape: f32[1,1,8], index: 3, kind: output, shape index: {}]  }
   0x1   :  { %v434_v0 = vld [vmem:[%s573_s1 + $0x20] sm:$0xff]  ;;  %v19_v1 = vld [vmem:[%s573_s1 + $0x10] sm:$0xff]  ;;  %373 = vset.pattern.permute.xlu2 %v407_v3  ;;  %372 = vset.pattern.permute.xlu1 %v407_v3 }
   0x2   :  { %v17_v2 = vld [vmem:[%s573_s1] sm:$0xff]  ;;  %371 = vset.pattern.permute.xlu0 %v407_v3  ;;  %56 = vperm.xlu2 %373, %v434_v0  }
   0x3   :  { %46 = vperm.xlu1 %372, %v19_v1   ;;  %36 = vperm.xlu0 %371, %v17_v2  }
   0x4   :  { %9 = vsyncpa [#allocation4], 0  ;;  %v22_v4 = vld [vmem:[%s573_s1 + $0x28] sm:$0xff]  ;;  %v20_v5 = vld [vmem:[%s573_s1 + $0x18] sm:$0xff]  ;;  %v408_v17 = vmov 1   ;;  %v409_v18 = vmov 2  }
   0x5   :  { %v18_v6 = vld [vmem:[%s573_s1 + $0x8] sm:$0xff]  ;;  %v25_v7 = vld [vmem:[%s573_s1 + $0x40] sm:$0xff]  ;;  %v24_v8 = vld [vmem:[%s573_s1 + $0x38] sm:$0xff]  ;;  %vm309_vm0 = vcmask 64512   ;;  %s410_s19 = smov [#allocation3]   ;;  %s358_s23 = sshll.u32 %s575_s3, 4  ;;  %s359_s23 = int_to_ptr.hbm [resolvable:$true] %s358_s23 }
   0x6   :  { %v23_v9 = vld [vmem:[%s573_s1 + $0x30] sm:$0xff]  ;;  %v28_v10 = vld [vmem:[%s573_s1 + $0x58] sm:$0xff]  ;;  %v26_v12 = vld [vmem:[%s573_s1 + $0x48] sm:$0xff]  ;;  %s356_s20 = sshll.u32 %s410_s19, 4  ;;  %vm349_vm1 = vcmask 57344   ;;  %s357_s20 = int_to_ptr.vmem [resolvable:$true] %s356_s20 }
   0x7   :  { %v27_v11 = vld [vmem:[%s573_s1 + $0x50] sm:$0xff]  ;;  %v30_v14 = vld [vmem:[%s573_s1 + $0x68] sm:$0xff]  ;;  %v29_v15 = vld [vmem:[%s573_s1 + $0x60] sm:$0xff] }
   0x8   :  { %v31_v13 = vld [vmem:[%s573_s1 + $0x70] sm:$0xff]  ;;  %v32_v16 = vld [vmem:[%s573_s1 + $0x78] sm:$0xff]  ;;  %v515_v50 = vld [vmem:[%s572_s0] ss:$0 sm:$0xff] }
   0xa   :  { %61 = vperm.xlu2 %373, %v22_v4  }
   0xb   :  { %51 = vperm.xlu1 %372, %v20_v5   ;;  %41 = vperm.xlu0 %371, %v18_v6  }
  0x12   :  { %76 = vperm.xlu2 %373, %v25_v7  }
  0x13   :  { %71 = vperm.xlu1 %372, %v24_v8   ;;  %66 = vperm.xlu0 %371, %v23_v9  }
  0x1a   :  { %91 = vperm.xlu2 %373, %v28_v10  }
  0x1b   :  { %86 = vperm.xlu1 %372, %v27_v11   ;;  %81 = vperm.xlu0 %371, %v26_v12  }
  0x22   :  { %106 = vperm.xlu2 %373, %v31_v13  }
  0x23   :  { %101 = vperm.xlu1 %372, %v30_v14   ;;  %96 = vperm.xlu0 %371, %v29_v15  }
  0x2a   :  { %375 = vset.pattern.permute.xlu2 %v408_v17 }
  0x2b   :  { %374 = vset.pattern.permute.xlu1 %v408_v17  ;;  %111 = vperm.xlu0 %371, %v32_v16  }
  0x2c   :  { %138 = vperm.xlu2 %375, %v18_v6   ;;  %134 = vperm.xlu1 %374, %v17_v2  }
  0x33   :  { %376 = vset.pattern.permute.xlu0 %v408_v17 }
  0x34   :  { %150 = vperm.xlu2 %375, %v434_v0   ;;  %146 = vperm.xlu1 %374, %v20_v5  }
  0x35   :  { %142 = vperm.xlu0 %376, %v19_v1  }
  0x3c   :  { %158 = vperm.xlu2 %375, %v23_v9   ;;  %154 = vperm.xlu1 %374, %v22_v4  }
  0x3d   :  { %162 = vperm.xlu0 %376, %v24_v8  }
  0x44   :  { %170 = vperm.xlu2 %375, %v26_v12   ;;  %166 = vperm.xlu1 %374, %v25_v7  }
  0x45   :  { %174 = vperm.xlu0 %376, %v27_v11  }
  0x4c   :  { %182 = vperm.xlu2 %375, %v29_v15   ;;  %178 = vperm.xlu1 %374, %v28_v10  }
  0x4d   :  { %186 = vperm.xlu0 %376, %v30_v14  }
  0x54   :  { %194 = vperm.xlu2 %375, %v32_v16   ;;  %190 = vperm.xlu1 %374, %v31_v13  }
  0x55   :  { %377 = vset.pattern.permute.xlu0 %v409_v18 }
  0x56   :  { %230 = vperm.xlu0 %377, %v17_v2  }
  0x5c   :  { %379 = vset.pattern.permute.xlu2 %v409_v18  ;;  %378 = vset.pattern.permute.xlu1 %v409_v18  ;;  %v57_v19 = vpop.permute.xlu2 %56 }
  0x5d   :  { %238 = vperm.xlu2 %379, %v19_v1   ;;  %234 = vperm.xlu1 %378, %v18_v6   ;;  %v121_v2 = vmul.f32 %v515_v50, %v57_v19 }
  0x5e   :  { %250 = vperm.xlu0 %377, %v22_v4  }
  0x64   :  { %v62_v20 = vpop.permute.xlu2 %61 }
  0x65   :  { %246 = vperm.xlu2 %379, %v434_v0   ;;  %242 = vperm.xlu1 %378, %v20_v5   ;;  %v122_v6 = vmul.f32 %v515_v50, %v62_v20 }
  0x66   :  { %262 = vperm.xlu0 %377, %v25_v7  }
  0x6c   :  { %v484_v21 = vpop.permute.xlu2 %76 }
  0x6d   :  { %258 = vperm.xlu2 %379, %v24_v8   ;;  %254 = vperm.xlu1 %378, %v23_v9  }
  0x6e   :  { %274 = vperm.xlu0 %377, %v28_v10  }
  0x74   :  { %v486_v22 = vpop.permute.xlu2 %91 }
  0x75   :  { %v47_v23 = vpop.permute.xlu1 %46  ;;  %270 = vperm.xlu2 %379, %v27_v11   ;;  %266 = vperm.xlu1 %378, %v26_v12   ;;  %v37_v24 = vpop.permute.xlu0 %36 }
  0x76   :  { %286 = vperm.xlu0 %377, %v31_v13   ;;  %v117_v52 = vmul.f32 %v515_v50, %v37_v24  ;;  %v119_v55 = vmul.f32 %v515_v50, %v47_v23 }
  0x7c   :  { %v488_v27 = vpop.permute.xlu2 %106 }
  0x7d   :  { %v52_v25 = vpop.permute.xlu1 %51  ;;  %282 = vperm.xlu2 %379, %v30_v14   ;;  %278 = vperm.xlu1 %378, %v29_v15   ;;  %v42_v26 = vpop.permute.xlu0 %41 }
  0x7e   :  { %v118_v53 = vmul.f32 %v515_v50, %v42_v26  ;;  %v120_v3 = vmul.f32 %v515_v50, %v52_v25  ;;  %v125_v26 = vmul.f32 %v515_v50, %v484_v21 }
  0x85   :  { %v72_v28 = vpop.permute.xlu1 %71  ;;  %290 = vperm.xlu1 %378, %v32_v16   ;;  %v67_v29 = vpop.permute.xlu0 %66 }
  0x86   :  { %v139_v30 = vpop.permute.xlu2 %138  ;;  %v124_v18 = vmul.f32 %v515_v50, %v72_v28  ;;  %v123_v20 = vmul.f32 %v515_v50, %v67_v29 }
  0x87   :  { %v198_v58 = vadd.f32 %v139_v30, %v118_v53 }
  0x89   :  { %v214_v61 = vmax.f32 %v198_v58, 0.0 }
  0x8d   :  { %v490_v31 = vpop.permute.xlu1 %86  ;;  %v492_v32 = vpop.permute.xlu0 %81 }
  0x8e   :  { %v151_v33 = vpop.permute.xlu2 %150 }
  0x8f   :  { %v201_v8 = vadd.f32 %v151_v33, %v121_v2 }
  0x91   :  { %v217_v16 = vmax.f32 %v201_v8, 0.0 }
  0x95   :  { %v494_v34 = vpop.permute.xlu1 %101  ;;  %v496_v35 = vpop.permute.xlu0 %96 }
  0x96   :  { %v159_v36 = vpop.permute.xlu2 %158  ;;  %v129_v8 = vmul.f32 %v515_v50, %v496_v35 }
  0x97   :  { %v203_v33 = vadd.f32 %v159_v36, %v123_v20  ;;  %v126_v36 = vmul.f32 %v515_v50, %v492_v32 }
  0x9d   :  { %v498_v37 = vpop.permute.xlu0 %111 }
  0x9e   :  { %v135_v38 = vpop.permute.xlu1 %134  ;;  %v500_v40 = vpop.permute.xlu2 %170 }
  0x9f   :  { %v197_v56 = vadd.f32 %v135_v38, %v117_v52 }
  0xa1   :  { %v213_v60 = vmax.f32 %v197_v56, 0.0 }
  0xa6   :  { %v147_v39 = vpop.permute.xlu1 %146  ;;  %v502_v44 = vpop.permute.xlu2 %182 }
  0xa7   :  { %v143_v41 = vpop.permute.xlu0 %142  ;;  %v200_v9 = vadd.f32 %v147_v39, %v120_v3 }
  0xa8   :  { %v199_v59 = vadd.f32 %v143_v41, %v119_v55  ;;  %v219_v55 = vmax.f32 %v203_v33, 0.0 }
  0xa9   :  { %v216_v17 = vmax.f32 %v200_v9, 0.0 }
  0xaa   :  { %v215_v62 = vmax.f32 %v199_v59, 0.0 }
  0xae   :  { %v155_v42 = vpop.permute.xlu1 %154  ;;  %v506_v47 = vpop.permute.xlu2 %194 }
  0xaf   :  { %v163_v43 = vpop.permute.xlu0 %162  ;;  %v202_v13 = vadd.f32 %v155_v42, %v122_v6 }
  0xb0   :  { %v204_v38 = vadd.f32 %v163_v43, %v124_v18 }
  0xb1   :  { %v218_v23 = vmax.f32 %v202_v13, 0.0 }
  0xb2   :  { %v220_v29 = vmax.f32 %v204_v38, 0.0 }
  0xb6   :  { %v167_v45 = vpop.permute.xlu1 %166 }
  0xb7   :  { %v504_v46 = vpop.permute.xlu0 %174  ;;  %v239_v51 = vpop.permute.xlu2 %238  ;;  %v205_v52 = vadd.f32 %v167_v45, %v125_v26  ;;  %v128_v45 = vmul.f32 %v515_v50, %v486_v22  ;;  %v130_v22 = vmul.f32 %v515_v50, %v494_v34 }
  0xb8   :  { %v295_v4 = vmul.f32 %v239_v51, %v215_v62 }
  0xb9   :  { %v221_v43 = vmax.f32 %v205_v52, 0.0 }
  0xba   :  { %v313_v14 = vsel %vm309_vm0, %v295_v4, 0.0 }
  0xbe   :  { %v508_v48 = vpop.permute.xlu1 %178 }
  0xbf   :  { %v510_v49 = vpop.permute.xlu0 %186  ;;  %v247_v0 = vpop.permute.xlu2 %246  ;;  %v208_v2 = vadd.f32 %v508_v48, %v128_v45  ;;  %v131_v48 = vmul.f32 %v515_v50, %v488_v27 }
  0xc0   :  { %v297_v24 = vmul.f32 %v247_v0, %v217_v16  ;;  %v210_v13 = vadd.f32 %v510_v49, %v130_v22 }
  0xc1   :  { %v224_v9 = vmax.f32 %v208_v2, 0.0 }
  0xc2   :  { %v317_v28 = vsel %vm309_vm0, %v297_v24, 0.0  ;;  %v226_v20 = vmax.f32 %v210_v13, 0.0 }
  0xc6   :  { %v519_v54 = vpop.permute.xlu1 %190 }
  0xc7   :  { %v259_v30 = vpop.permute.xlu2 %258  ;;  %v211_v34 = vadd.f32 %v519_v54, %v131_v48 }
  0xc8   :  { %v231_v57 = vpop.permute.xlu0 %230  ;;  %v300_v59 = vmul.f32 %v259_v30, %v220_v29 }
  0xc9   :  { %v293_v63 = vmul.f32 %v231_v57, %v213_v60  ;;  %v127_v57 = vmul.f32 %v515_v50, %v490_v31  ;;  %v227_v49 = vmax.f32 %v211_v34, 0.0 }
  0xca   :  { %v323_v3 = vsel %vm309_vm0, %v300_v59, 0.0 }
  0xcb   :  { %v310_v10 = vsel %vm309_vm0, %v293_v63, 0.0  ;;  %v207_v62 = vadd.f32 %v504_v46, %v127_v57 }
  0xcd   :  { %v223_v6 = vmax.f32 %v207_v62, 0.0 }
  0xcf   :  { %v235_v1 = vpop.permute.xlu1 %234 }
  0xd0   :  { %v294_v5 = vmul.f32 %v235_v1, %v214_v61  ;;  %v251_v7 = vpop.permute.xlu0 %250  ;;  %v206_v61 = vadd.f32 %v500_v40, %v126_v36  ;;  %v271_v1 = vpop.permute.xlu2 %270 }
  0xd1   :  { %v298_v39 = vmul.f32 %v251_v7, %v218_v23 }
  0xd2   :  { %v311_v11 = vsel %vm309_vm0, %v294_v5, 0.0  ;;  %v222_v5 = vmax.f32 %v206_v61, 0.0 }
  0xd3   :  { %v312_v12 = vadd.f32 %v311_v11, %v310_v10  ;;  %v319_v56 = vsel %vm309_vm0, %v298_v39, 0.0  ;;  %v303_v10 = vmul.f32 %v271_v1, %v223_v6 }
  0xd5   :  { %v314_v15 = vadd.f32 %v313_v14, %v312_v12  ;;  %v209_v12 = vadd.f32 %v502_v44, %v129_v8  ;;  %v132_v44 = vmul.f32 %v515_v50, %v498_v37 }
  0xd7   :  { %v243_v19 = vpop.permute.xlu1 %242  ;;  %v212_v33 = vadd.f32 %v506_v47, %v132_v44 }
  0xd8   :  { %v296_v25 = vmul.f32 %v243_v19, %v216_v17  ;;  %v263_v51 = vpop.permute.xlu0 %262  ;;  %v329_v17 = vsel %vm309_vm0, %v303_v10, 0.0  ;;  %v283_v18 = vpop.permute.xlu2 %282  ;;  %v225_v19 = vmax.f32 %v209_v12, 0.0 }
  0xd9   :  { %v301_v63 = vmul.f32 %v263_v51, %v221_v43  ;;  %v306_v26 = vmul.f32 %v283_v18, %v226_v20  ;;  %v228_v51 = vmax.f32 %v212_v33, 0.0 }
  0xda   :  { %v315_v41 = vsel %vm309_vm0, %v296_v25, 0.0 }
  0xdb   :  { %v316_v42 = vadd.f32 %v315_v41, %v314_v15  ;;  %v325_v7 = vsel %vm309_vm0, %v301_v63, 0.0  ;;  %v335_v41 = vsel %vm309_vm0, %v306_v26, 0.0 }
  0xdd   :  { %v318_v53 = vadd.f32 %v317_v28, %v316_v42 }
  0xdf   :  { %v255_v21 = vpop.permute.xlu1 %254  ;;  %v320_v58 = vadd.f32 %v319_v56, %v318_v53 }
  0xe0   :  { %v299_v60 = vmul.f32 %v255_v21, %v219_v55  ;;  %v275_v4 = vpop.permute.xlu0 %274 }
  0xe1   :  { %v304_v14 = vmul.f32 %v275_v4, %v224_v9 }
  0xe2   :  { %v321_v0 = vsel %vm309_vm0, %v299_v60, 0.0 }
  0xe3   :  { %v322_v31 = vadd.f32 %v321_v0, %v320_v58  ;;  %v331_v23 = vsel %vm309_vm0, %v304_v14, 0.0  ;;  %v347_v58 = vstv %s574_s2 }
  0xe5   :  { %v324_v32 = vadd.f32 %v323_v3, %v322_v31 }
  0xe7   :  { %v267_v40 = vpop.permute.xlu1 %266  ;;  %v326_v46 = vadd.f32 %v325_v7, %v324_v32 }
  0xe8   :  { %v302_v11 = vmul.f32 %v267_v40, %v222_v5  ;;  %v287_v24 = vpop.permute.xlu0 %286 }
  0xe9   :  { %v307_v54 = vmul.f32 %v287_v24, %v227_v49 }
  0xea   :  { %v327_v15 = vsel %vm309_vm0, %v302_v11, 0.0 }
  0xeb   :  { %v328_v16 = vadd.f32 %v327_v15, %v326_v46  ;;  %v337_v52 = vsel %vm309_vm0, %v307_v54, 0.0 }
  0xed   :  { %v330_v35 = vadd.f32 %v329_v17, %v328_v16 }
  0xef   :  { %v279_v27 = vpop.permute.xlu1 %278  ;;  %v332_v25 = vadd.f32 %v331_v23, %v330_v35 }
  0xf0   :  { %v305_v30 = vmul.f32 %v279_v27, %v225_v19 }
  0xf2   :  { %v333_v38 = vsel %vm309_vm0, %v305_v30, 0.0 }
  0xf3   :  { %v334_v39 = vadd.f32 %v333_v38, %v332_v25 }
  0xf5   :  { %v336_v42 = vadd.f32 %v335_v41, %v334_v39 }
  0xf7   :  { %v291_v28 = vpop.permute.xlu1 %290  ;;  %v338_v53 = vadd.f32 %v337_v52, %v336_v42 }
  0xf8   :  { %v308_v55 = vmul.f32 %v291_v28, %v228_v51 }
  0xfa   :  { %v339_v37 = vsel %vm309_vm0, %v308_v55, 0.0 }
  0xfb   :  { %v340_v50 = vadd.f32 %v339_v37, %v338_v53 }
  0xfd   :  { %v341_v29 = vrot.slane %v340_v50, 4 }
  0xff   :  { %v342_v56 = vadd.f32 %v341_v29, %v340_v50 }
 0x101   :  { %v343_v57 = vrot.slane %v342_v56, 2 }
 0x103   :  { %v344_v47 = vadd.f32 %v343_v57, %v342_v56 }
 0x105   :  { %v345_v21 = vrot.slane %v344_v47, 1 }
 0x107   :  { %v346_v36 = vadd.f32 %v345_v21, %v344_v47 }
 0x109   :  { %v348_v43 = vadd.f32 %v347_v58, %v346_v36 }
 0x10b   :  { %350 = vst.msk [vmem:[#allocation3] sm:$0x1] %vm349_vm1, %v348_v43 }
 0x10c   :  { %361 = dma.vmem_to_hbm [thread:$0]  %s357_s20, 16, %s359_s23, [#allocation4]  }
 0x10d   :  { %405 = dma.done.wait [#allocation4], 16  }
 0x10e   :  { %406 = vsyncadd [#allocation4], 4294967280 }
 0x10f   :  { %366 = vsyncpa [#allocation4], 1 }

</bundles_post_ra>
